<compile_context>
chip_gen: v6e
topology: v6e:2x2x1
jax: 0.10.0
libtpu: 0.0.40
codegen_flags: <defaults>
</compile_context>

<pallas_src>
import functools

import jax
import jax.numpy as jnp
from jax.experimental import pallas as pl
from jax.experimental.pallas import tpu as pltpu

F_PAD = 128          # every feature dim (100/50/70/20/4) padded to one lane width
TILE_B_MAX = 2048    # max batch tile; footprint ~6-8 MiB VMEM, fine on all gens
N_LAYERS = 5         # after fusing the first two (bias-only-separated) linears


def _round_up(n, m):
    return ((n + m - 1) // m) * m


def _act_dtype():
    """bf16 activation math on chips with bf16 VPU/EUP (v6e/v7x); f32 on v5-."""
    try:
        kind = jax.devices()[0].device_kind.lower()
    except Exception:
        return jnp.float32
    if any(f"v{g}" in kind for g in (2, 3, 4, 5)):
        return jnp.float32
    return jnp.bfloat16


def _sigmoid(x, act_dtype):
    # sigmoid(x) = 0.5 * tanh(0.5 * x) + 0.5  -> single EUP transcendental
    # (vs exp + reciprocal), computed in `act_dtype`.
    x = x.astype(act_dtype)
    return jnp.tanh(x * 0.5) * 0.5 + 0.5


def mlp_kernel(x_ref, w_ref, b_ref, o_ref, *, act_dtype):
    # x_ref: (tile_b, 128) bf16   w_ref: (5, 128, 128) bf16   b_ref: (5, 1, 128) f32
    h = x_ref[...]
    # 4 x [Linear + Sigmoid]  (Dropout == identity at inference).
    # Layer 0 is the fused input_layer(100,50) @ hidden0(50,100).
    for layer in range(N_LAYERS - 1):
        h = jnp.dot(h.astype(w_ref.dtype), w_ref[layer],
                    preferred_element_type=jnp.float32) + b_ref[layer]
        h = _sigmoid(h, act_dtype)
    # output_layer: Linear(20,4), lane-dense bf16 store; slice [:, :4] outside.
    o_ref[...] = (jnp.dot(h.astype(w_ref.dtype), w_ref[N_LAYERS - 1],
                          preferred_element_type=jnp.float32)
                  + b_ref[N_LAYERS - 1]).astype(o_ref.dtype)


def _pad2d(a, rows, cols):
    return jnp.pad(a, ((0, rows - a.shape[0]), (0, cols - a.shape[1])))


def prepare_params(params, compute_dtype=jnp.bfloat16):
    """params: 6 (W(in,out), b(1,out)) f32 pairs in forward order.

    Fuses the first two (bias-only-separated) linears, zero-pads every feature
    dim to 128, and packs weights -> (5,128,128) `compute_dtype`, biases ->
    (5,1,128) f32 (added to the f32 MXU accumulator). Padded rows/cols/lanes
    are exactly 0, so sigmoid(0)=0.5 in padded lanes cannot leak downstream.
    """
    (w_in, b_in), (w_h0, b_h0), (w_h1, b_h1), (w_h2, b_h2), \
        (w_h3, b_h3), (w_out, b_out) = params

    # Fuse Linear(100,50) o Linear(50,100): no nonlinearity in between (f32).
    w_f = w_in @ w_h0              # (100, 100)
    b_f = b_in @ w_h0 + b_h0       # (1, 100)

    layers = [(w_f, b_f), (w_h1, b_h1), (w_h2, b_h2), (w_h3, b_h3),
              (w_out, b_out)]
    w_pack = jnp.stack([_pad2d(w, F_PAD, F_PAD).astype(compute_dtype)
                        for w, _ in layers])                      # (5,128,128)
    b_pack = jnp.stack([_pad2d(b, 1, F_PAD).astype(jnp.float32)
                        for _, b in layers])                      # (5,1,128)
    return w_pack, b_pack


def net_forward(x, params, compute_dtype=jnp.bfloat16):
    """x: (batch, 100) float32. params: list of 6 (W(in,out), b(1,out)) pairs."""
    batch, feat = x.shape
    w_pack, b_pack = prepare_params(params, compute_dtype)
    act_dtype = _act_dtype()

    # Pick number of grid steps first (>=2 and even so both v7x TCs get work),
    # then shape the tile to the batch to minimize padding waste.
    steps = max(2, pl.cdiv(batch, TILE_B_MAX))
    if steps % 2:
        steps += 1
    tile_b = _round_up(pl.cdiv(batch, steps), 8)
    padded_batch = steps * tile_b

    x_p = jnp.pad(x, ((0, padded_batch - batch),
                      (0, F_PAD - feat))).astype(compute_dtype)

    grid = (padded_batch // tile_b,)

    x_spec = pl.BlockSpec((tile_b, F_PAD), lambda i: (i, 0))
    w_spec = pl.BlockSpec((N_LAYERS, F_PAD, F_PAD), lambda i: (0, 0, 0))  # VMEM-resident
    b_spec = pl.BlockSpec((N_LAYERS, 1, F_PAD), lambda i: (0, 0, 0))      # VMEM-resident
    out_spec = pl.BlockSpec((tile_b, F_PAD), lambda i: (i, 0))

    itemsize = jnp.dtype(compute_dtype).itemsize
    cost = pl.CostEstimate(
        flops=2 * padded_batch * F_PAD * F_PAD * N_LAYERS,
        transcendentals=padded_batch * F_PAD * (N_LAYERS - 1),  # one tanh/elem/layer
        bytes_accessed=int(x_p.size * itemsize
                           + w_pack.size * itemsize
                           + b_pack.size * 4
                           + padded_batch * F_PAD * itemsize),
    )

    out_padded = pl.pallas_call(
        functools.partial(mlp_kernel, act_dtype=act_dtype),
        out_shape=jax.ShapeDtypeStruct((padded_batch, F_PAD), compute_dtype),
        grid=grid,
        in_specs=[x_spec, w_spec, b_spec],
        out_specs=out_spec,
        compiler_params=pltpu.CompilerParams(
            dimension_semantics=("parallel",),
            vmem_limit_bytes=32 * 1024 * 1024),
        cost_estimate=cost,
    )(x_p, w_pack, b_pack)

    return out_padded[:batch, :4].astype(jnp.float32)


def init_params(key):
    """Deterministic init mimicking PyTorch Linear default (U[-1/sqrt(fan_in), +])."""
    # (in_features, out_features) per layer in forward order.
    dims = [(100, 50), (50, 100), (100, 50), (50, 70), (70, 20), (20, 4)]
    params = []
    for (fan_in, fan_out) in dims:
        key, kw, kb = jax.random.split(key, 3)
        bound = 1.0 / (fan_in ** 0.5)
        w = jax.random.uniform(kw, (fan_in, fan_out), jnp.float32,
                               minval=-bound, maxval=bound)
        b = jax.random.uniform(kb, (1, fan_out), jnp.float32,
                               minval=-bound, maxval=bound)
        params.append((w, b))
    return params


def reference_forward(x, params):
    """Pure-JAX f32 reference (unfused, unpadded) for a sanity check."""
    h = x @ params[0][0] + params[0][1]
    for w, b in params[1:5]:
        h = jax.nn.sigmoid(h @ w + b)
    return h @ params[5][0] + params[5][1]


if __name__ == "__main__":
    key = jax.random.PRNGKey(0)
    key, kx = jax.random.split(key)

    batch = 16
    x = jax.random.normal(kx, (batch, 100), jnp.float32)
    params = init_params(key)

    out = net_forward(x, params)
    out = jax.block_until_ready(out)

    ref = reference_forward(x, params)
    assert out.shape == (batch, 4), out.shape
    # Loose tolerance: bf16 matmuls (f32 accumulate), bf16 tanh-sigmoid (on
    # v6e/v7x) and a bf16 output store.
    assert jnp.allclose(out, ref, atol=1e-1, rtol=1e-1), (
        "mismatch vs reference, max abs diff = "
        + str(float(jnp.max(jnp.abs(out - ref)))))

    print("KERNEL_OK")
</pallas_src>

<mosaic_0001>
module attributes {stable_mosaic.version = 11 : i64} {
  func.func @mlp_kernel(%arg0: i32, %arg1: memref<8x128xbf16, #tpu.memory_space<vmem>>, %arg2: memref<5x128x128xbf16, #tpu.memory_space<vmem>>, %arg3: memref<5x1x128xf32, #tpu.memory_space<vmem>>, %arg4: memref<8x128xbf16, #tpu.memory_space<vmem>>) attributes {dimension_semantics = [#tpu.dimension_semantics<parallel>], iteration_bounds = array<i64: 2>, scalar_prefetch = 0 : i64, scratch_operands = 0 : i64, tpu.core_type = #tpu.core_type<tc>, window_params = [{transform_indices = @transform_0, window_bounds = array<i64: 8, 128>}, {pipeline_mode = #tpu.pipeline_mode<synchronous>, transform_indices = @transform_1, window_bounds = array<i64: 5, 128, 128>}, {pipeline_mode = #tpu.pipeline_mode<synchronous>, transform_indices = @transform_2, window_bounds = array<i64: 5, 1, 128>}, {transform_indices = @transform_3, window_bounds = array<i64: 8, 128>}]} {
    %c0 = arith.constant 0 : index
    %c0_0 = arith.constant 0 : index
    %0 = vector.load %arg1[%c0, %c0_0] : memref<8x128xbf16, #tpu.memory_space<vmem>>, vector<8x128xbf16>
    %c0_1 = arith.constant 0 : index
    %c0_2 = arith.constant 0 : index
    %c0_3 = arith.constant 0 : index
    %1 = vector.load %arg2[%c0_1, %c0_2, %c0_3] : memref<5x128x128xbf16, #tpu.memory_space<vmem>>, vector<1x128x128xbf16>
    %2 = vector.shape_cast %1 : vector<1x128x128xbf16> to vector<128x128xbf16>
    %cst = arith.constant dense<0.000000e+00> : vector<8x128xf32>
    %3 = tpu.matmul %0, %2, %cst {dimension_numbers = #tpu.dot_dimension_numbers<[1], [0], [0], [1], [0, 0, 1, 1], [], []>} : vector<8x128xbf16>, vector<128x128xbf16>, vector<8x128xf32> -> vector<8x128xf32>
    %c0_4 = arith.constant 0 : index
    %c0_5 = arith.constant 0 : index
    %c0_6 = arith.constant 0 : index
    %4 = vector.load %arg3[%c0_4, %c0_5, %c0_6] : memref<5x1x128xf32, #tpu.memory_space<vmem>>, vector<1x1x128xf32>
    %5 = vector.shape_cast %4 : vector<1x1x128xf32> to vector<1x128xf32>
    %6 = vector.broadcast %5 : vector<1x128xf32> to vector<8x128xf32>
    %7 = arith.addf %3, %6 : vector<8x128xf32>
    %8 = arith.truncf %7 : vector<8x128xf32> to vector<8x128xbf16>
    %cst_7 = arith.constant 5.000000e-01 : bf16
    %9 = vector.broadcast %cst_7 : bf16 to vector<8x128xbf16>
    %10 = arith.mulf %8, %9 : vector<8x128xbf16>
    %11 = math.tanh %10 : vector<8x128xbf16>
    %cst_8 = arith.constant 5.000000e-01 : bf16
    %12 = vector.broadcast %cst_8 : bf16 to vector<8x128xbf16>
    %13 = arith.mulf %11, %12 : vector<8x128xbf16>
    %cst_9 = arith.constant 5.000000e-01 : bf16
    %14 = vector.broadcast %cst_9 : bf16 to vector<8x128xbf16>
    %15 = arith.addf %13, %14 : vector<8x128xbf16>
    %c1 = arith.constant 1 : index
    %c0_10 = arith.constant 0 : index
    %c0_11 = arith.constant 0 : index
    %16 = vector.load %arg2[%c1, %c0_10, %c0_11] : memref<5x128x128xbf16, #tpu.memory_space<vmem>>, vector<1x128x128xbf16>
    %17 = vector.shape_cast %16 : vector<1x128x128xbf16> to vector<128x128xbf16>
    %cst_12 = arith.constant dense<0.000000e+00> : vector<8x128xf32>
    %18 = tpu.matmul %15, %17, %cst_12 {dimension_numbers = #tpu.dot_dimension_numbers<[1], [0], [0], [1], [0, 0, 1, 1], [], []>} : vector<8x128xbf16>, vector<128x128xbf16>, vector<8x128xf32> -> vector<8x128xf32>
    %c1_13 = arith.constant 1 : index
    %c0_14 = arith.constant 0 : index
    %c0_15 = arith.constant 0 : index
    %19 = vector.load %arg3[%c1_13, %c0_14, %c0_15] : memref<5x1x128xf32, #tpu.memory_space<vmem>>, vector<1x1x128xf32>
    %20 = vector.shape_cast %19 : vector<1x1x128xf32> to vector<1x128xf32>
    %21 = vector.broadcast %20 : vector<1x128xf32> to vector<8x128xf32>
    %22 = arith.addf %18, %21 : vector<8x128xf32>
    %23 = arith.truncf %22 : vector<8x128xf32> to vector<8x128xbf16>
    %cst_16 = arith.constant 5.000000e-01 : bf16
    %24 = vector.broadcast %cst_16 : bf16 to vector<8x128xbf16>
    %25 = arith.mulf %23, %24 : vector<8x128xbf16>
    %26 = math.tanh %25 : vector<8x128xbf16>
    %cst_17 = arith.constant 5.000000e-01 : bf16
    %27 = vector.broadcast %cst_17 : bf16 to vector<8x128xbf16>
    %28 = arith.mulf %26, %27 : vector<8x128xbf16>
    %cst_18 = arith.constant 5.000000e-01 : bf16
    %29 = vector.broadcast %cst_18 : bf16 to vector<8x128xbf16>
    %30 = arith.addf %28, %29 : vector<8x128xbf16>
    %c2 = arith.constant 2 : index
    %c0_19 = arith.constant 0 : index
    %c0_20 = arith.constant 0 : index
    %31 = vector.load %arg2[%c2, %c0_19, %c0_20] : memref<5x128x128xbf16, #tpu.memory_space<vmem>>, vector<1x128x128xbf16>
    %32 = vector.shape_cast %31 : vector<1x128x128xbf16> to vector<128x128xbf16>
    %cst_21 = arith.constant dense<0.000000e+00> : vector<8x128xf32>
    %33 = tpu.matmul %30, %32, %cst_21 {dimension_numbers = #tpu.dot_dimension_numbers<[1], [0], [0], [1], [0, 0, 1, 1], [], []>} : vector<8x128xbf16>, vector<128x128xbf16>, vector<8x128xf32> -> vector<8x128xf32>
    %c2_22 = arith.constant 2 : index
    %c0_23 = arith.constant 0 : index
    %c0_24 = arith.constant 0 : index
    %34 = vector.load %arg3[%c2_22, %c0_23, %c0_24] : memref<5x1x128xf32, #tpu.memory_space<vmem>>, vector<1x1x128xf32>
    %35 = vector.shape_cast %34 : vector<1x1x128xf32> to vector<1x128xf32>
    %36 = vector.broadcast %35 : vector<1x128xf32> to vector<8x128xf32>
    %37 = arith.addf %33, %36 : vector<8x128xf32>
    %38 = arith.truncf %37 : vector<8x128xf32> to vector<8x128xbf16>
    %cst_25 = arith.constant 5.000000e-01 : bf16
    %39 = vector.broadcast %cst_25 : bf16 to vector<8x128xbf16>
    %40 = arith.mulf %38, %39 : vector<8x128xbf16>
    %41 = math.tanh %40 : vector<8x128xbf16>
    %cst_26 = arith.constant 5.000000e-01 : bf16
    %42 = vector.broadcast %cst_26 : bf16 to vector<8x128xbf16>
    %43 = arith.mulf %41, %42 : vector<8x128xbf16>
    %cst_27 = arith.constant 5.000000e-01 : bf16
    %44 = vector.broadcast %cst_27 : bf16 to vector<8x128xbf16>
    %45 = arith.addf %43, %44 : vector<8x128xbf16>
    %c3 = arith.constant 3 : index
    %c0_28 = arith.constant 0 : index
    %c0_29 = arith.constant 0 : index
    %46 = vector.load %arg2[%c3, %c0_28, %c0_29] : memref<5x128x128xbf16, #tpu.memory_space<vmem>>, vector<1x128x128xbf16>
    %47 = vector.shape_cast %46 : vector<1x128x128xbf16> to vector<128x128xbf16>
    %cst_30 = arith.constant dense<0.000000e+00> : vector<8x128xf32>
    %48 = tpu.matmul %45, %47, %cst_30 {dimension_numbers = #tpu.dot_dimension_numbers<[1], [0], [0], [1], [0, 0, 1, 1], [], []>} : vector<8x128xbf16>, vector<128x128xbf16>, vector<8x128xf32> -> vector<8x128xf32>
    %c3_31 = arith.constant 3 : index
    %c0_32 = arith.constant 0 : index
    %c0_33 = arith.constant 0 : index
    %49 = vector.load %arg3[%c3_31, %c0_32, %c0_33] : memref<5x1x128xf32, #tpu.memory_space<vmem>>, vector<1x1x128xf32>
    %50 = vector.shape_cast %49 : vector<1x1x128xf32> to vector<1x128xf32>
    %51 = vector.broadcast %50 : vector<1x128xf32> to vector<8x128xf32>
    %52 = arith.addf %48, %51 : vector<8x128xf32>
    %53 = arith.truncf %52 : vector<8x128xf32> to vector<8x128xbf16>
    %cst_34 = arith.constant 5.000000e-01 : bf16
    %54 = vector.broadcast %cst_34 : bf16 to vector<8x128xbf16>
    %55 = arith.mulf %53, %54 : vector<8x128xbf16>
    %56 = math.tanh %55 : vector<8x128xbf16>
    %cst_35 = arith.constant 5.000000e-01 : bf16
    %57 = vector.broadcast %cst_35 : bf16 to vector<8x128xbf16>
    %58 = arith.mulf %56, %57 : vector<8x128xbf16>
    %cst_36 = arith.constant 5.000000e-01 : bf16
    %59 = vector.broadcast %cst_36 : bf16 to vector<8x128xbf16>
    %60 = arith.addf %58, %59 : vector<8x128xbf16>
    %c4 = arith.constant 4 : index
    %c0_37 = arith.constant 0 : index
    %c0_38 = arith.constant 0 : index
    %61 = vector.load %arg2[%c4, %c0_37, %c0_38] : memref<5x128x128xbf16, #tpu.memory_space<vmem>>, vector<1x128x128xbf16>
    %62 = vector.shape_cast %61 : vector<1x128x128xbf16> to vector<128x128xbf16>
    %cst_39 = arith.constant dense<0.000000e+00> : vector<8x128xf32>
    %63 = tpu.matmul %60, %62, %cst_39 {dimension_numbers = #tpu.dot_dimension_numbers<[1], [0], [0], [1], [0, 0, 1, 1], [], []>} : vector<8x128xbf16>, vector<128x128xbf16>, vector<8x128xf32> -> vector<8x128xf32>
    %c4_40 = arith.constant 4 : index
    %c0_41 = arith.constant 0 : index
    %c0_42 = arith.constant 0 : index
    %64 = vector.load %arg3[%c4_40, %c0_41, %c0_42] : memref<5x1x128xf32, #tpu.memory_space<vmem>>, vector<1x1x128xf32>
    %65 = vector.shape_cast %64 : vector<1x1x128xf32> to vector<1x128xf32>
    %66 = vector.broadcast %65 : vector<1x128xf32> to vector<8x128xf32>
    %67 = arith.addf %63, %66 : vector<8x128xf32>
    %68 = arith.truncf %67 : vector<8x128xf32> to vector<8x128xbf16>
    %c0_43 = arith.constant 0 : index
    %c0_44 = arith.constant 0 : index
    %69 = vector.load %arg4[%c0_43, %c0_44] : memref<8x128xbf16, #tpu.memory_space<vmem>>, vector<8x128xbf16>
    tpu.vector_store %arg4[%c0_43, %c0_44], %68 {strides = array<i32>} : memref<8x128xbf16, #tpu.memory_space<vmem>>, vector<8x128xbf16>,
    return
  }
  func.func @transform_0(%arg0: i32) -> (i32, i32) {
    %c0_i32 = arith.constant 0 : i32
    %c0_i32_0 = arith.constant 0 : i32
    return %arg0, %c0_i32 : i32, i32
  }
  func.func @transform_1(%arg0: i32) -> (i32, i32, i32) {
    %c0_i32 = arith.constant 0 : i32
    %c0_i32_0 = arith.constant 0 : i32
    %c0_i32_1 = arith.constant 0 : i32
    %c0_i32_2 = arith.constant 0 : i32
    return %c0_i32, %c0_i32_0, %c0_i32_1 : i32, i32, i32
  }
  func.func @transform_2(%arg0: i32) -> (i32, i32, i32) {
    %c0_i32 = arith.constant 0 : i32
    %c0_i32_0 = arith.constant 0 : i32
    %c0_i32_1 = arith.constant 0 : i32
    %c0_i32_2 = arith.constant 0 : i32
    return %c0_i32, %c0_i32_0, %c0_i32_1 : i32, i32, i32
  }
  func.func @transform_3(%arg0: i32) -> (i32, i32) {
    %c0_i32 = arith.constant 0 : i32
    %c0_i32_0 = arith.constant 0 : i32
    return %arg0, %c0_i32 : i32, i32
  }
}

</mosaic_0001>

<bundles_post_ra>
// kernel: tpu_custom_call.1
= control target key start
LH: loop header
LB: loop body
LE: loop exit
PB: predicated region body
PF: predicated region fallthrough
CT: control target
= control target key end

     0   :  { %8 = vsyncpa [#allocation3], 0  ;;  %s1655_s0 = inlined_call_operand.hbm [shape: bf16[16,128], index: 0, kind: input, shape index: {}]   ;;  %s1656_s1 = inlined_call_operand.hbm [shape: bf16[5,128,128], index: 1, kind: input, shape index: {}]   ;;  %s1657_s2 = inlined_call_operand.hbm [shape: f32[5,1,128], index: 2, kind: input, shape index: {}]   ;;  %s1658_s3 = inlined_call_operand.hbm [shape: bf16[16,128], index: 3, kind: output, shape index: {}]  }
   0x1   :  { %10 = vsyncpa [#allocation3 + $0x1], 0 }
   0x2   :  { %11 = vsyncpa [#allocation6], 0 }
   0x3   :  { %12 = vsyncpa [#allocation4], 0 }
   0x4   :  { %14 = vsyncpa [#allocation4 + $0x1], 0  ;;  %s1413_s12 = smov 0   ;;  %s1415_s13 = smov 0  }
   0x5   :  { %s1417_s14 = smov 0   ;;  %s1419_s15 = smov 0  }
   0x6 LB: > { %s1434_s16 = sadd.s32 4294967295, %s1381_s15   ;;  %s906_s17 = sadd.s32 4294967294, %s1381_s15   ;;  %s1381_s15 = sphi %s1419_s15, %s1679_s15   ;;  %s1377_s14 = sphi %s1417_s14, %s1678_s14   ;;  %s1373_s13 = sphi %s1415_s13, %s1677_s13   ;;  %s1369_s12 = sphi %s1413_s12, %s1676_s12  }
   0x7   : > { %p40_p0 = scmp.ne.s32.totalorder %s1373_s13, %s1369_s12  ;;  %p1659_p1 = scmp.eq.s32.totalorder %s1434_s16, 0 }
   0x8   : > { %p106_p2 = scmp.eq.s32.totalorder %s1434_s16, 1  ;;  %p112_p3 = scmp.eq.s32.totalorder %s906_s17, 1 }
   0x9   : > { %p1443_p4 = por %p1659_p1, %p40_p0  ;;  %p907_p5 = scmp.ge.s32.totalorder %s1381_s15, 1 }
   0xa   : > { %p1448_p6 = por %p112_p3, %p40_p0  ;;  %p119_p7 = scmp.lt.s32.totalorder %s1381_s15, 3 }
   0xb   : > { %s1663_s18 = scalar_select %p1443_p4, 1, 0 }
   0xc   : > { %s1664_s19 = scalar_select %p1448_p6, 1, 0 }
   0xd   : > { %p1453_p8 = pnand %p907_p5, %p119_p7  ;;  %s1383_s21 = smov [#allocation5]  }
   0xe   : > { %s131_s22 = sshll.u32 %s1383_s21, 4  ;;  %s1384_s24 = smov [#allocation7]   ;;  %s132_s22 = int_to_ptr.vmem [resolvable:$true] %s131_s22 }
   0xf   : > { %s1665_s20 = scalar_select %p1453_p8, 1, 0 }
  0x10   : > { %p1124_p9 = pneg %p1453_p8  ;;  %s144_s25 = sshll.u32 %s1384_s24, 4  ;;  %s1466_s25 = int_to_ptr.vmem [resolvable:$true] %s144_s25 }
  0x11   : > { %s1244_s26 = scalar_lea.vmem %s132_s22, 5120  ;;  %p1252_p5 = scmp.lt.s32.totalorder %s132_s22, %s132_s22 }
  0x12   : > { %p1462_p11 = pnand %p1124_p9, %p1659_p1  ;;  %p1245_p13 = scmp.ne.s32.totalorder %s132_s22, %s1244_s26 }
  0x13   : > { %p1253_p7 = scmp.lt.s32.totalorder %s1244_s26, %s1244_s26 }
  0x14   : > { %p1235_p12 = pneg %p1462_p11 }
  0x15   : > { %p1254_p9 = por %p1253_p7, %p1252_p5 }
  0x16   : > { %p1247_p0 = pnand %p1245_p13, %p1235_p12 }
  0x18   : > { %p1248_p3 = pneg %p1247_p0 }
  0x1a   : > { %p1255_p10 = pnand %p1254_p9, %p1248_p3 }
  0x1c   : > { %1258 = shalt.err (!%p1255_p10)
}
  0x1d   : > { %s1385_s27 = smov 64   ;;  %s1386_s28 = smov 4  }
  0x1e   : > { %1127 = dma.hbm_to_vmem [thread:$0]  (!%p1462_p11), %s1656_s1, 5120, %s132_s22, [#allocation6], %s1385_s27, %s1385_s27, %s1386_s28  }
  0x1f   : > { %s1270_s4 = scalar_lea.vmem %s1466_s25, 80  ;;  %s1277_s5 = scalar_lea.vmem %s1466_s25, 96 }
  0x20   : > { %p1271_p13 = scmp.ne.s32.totalorder %s1466_s25, %s1270_s4  ;;  %p1278_p10 = scmp.lt.s32.totalorder %s1466_s25, %s1466_s25 }
  0x21   : > { %p1279_p5 = scmp.lt.s32.totalorder %s1277_s5, %s1270_s4 }
  0x22   : > { %p1273_p0 = pnand %p1271_p13, %p1235_p12 }
  0x23   : > { %p1280_p7 = por %p1279_p5, %p1278_p10 }
  0x24   : > { %p1274_p3 = pneg %p1273_p0 }
  0x26   : > { %p1281_p9 = pnand %p1280_p7, %p1274_p3 }
  0x28   : > { %1284 = shalt.err (!%p1281_p9)
}
  0x29   : > { %s1387_s6 = smov 16   ;;  %s1388_s7 = smov 1  }
  0x2a   : > { %1130 = dma.hbm_to_vmem [thread:$0]  (!%p1462_p11), %s1657_s2, 80, %s1466_s25, [#allocation6], %s1387_s6, %s1387_s6, %s1388_s7  }
  0x2b   : > { %s1493_s10 = sadd.s32 1, %s1381_s15   ;;  %s27_s17 = sadd.s32 1, %s1377_s14 }
  0x2c   : > { %s24_s11 = ssub.s32 %s1381_s15, %s1493_s10  ;;  %p34_p13 = scmp.ne.s32.totalorder %s1377_s14, %s1373_s13 }
  0x2d   : > { %p25_p12 = scmp.eq.s32.totalorder %s24_s11, 0  ;;  %p35_p0 = scmp.eq.s32.totalorder %s1381_s15, 0 }
  0x2e   : > { %p1506_p10 = por %p106_p2, %p34_p13  ;;  %p1141_p5 = scmp.lt.s32.totalorder %s1381_s15, 2 }
  0x2f   : > { %s1502_s21 = scalar_select %p25_p12, %s1377_s14, %s27_s17  }
  0x30   : > { %p36_p3 = por %p35_p0, %p34_p13  ;;  %s158_s23 = sand.u32 1, %s1377_s14  }
  0x31   : > { %s1667_s22 = scalar_select %p1506_p10, 1, 0 }
  0x32   : > { %s911_s24 = sshll.u32 %s158_s23, 2  ;;  %s912_s25 = sshll.u32 %s1381_s15, 6 }
  0x33   : > { %s1516_s28 = scalar_lea.hbm %s1655_s0, %s912_s25  ;;  %s162_s29 = scalar_lea.vmem [#allocation2], %s911_s24 }
  0x34   : > { %s169_s30 = sshll.u32 %s162_s29, 4  ;;  %p1518_p11 = pnand %p1141_p5, %p36_p3  ;;  %s170_s30 = int_to_ptr.vmem [resolvable:$true] %s169_s30 }
  0x35   : > { %s159_s5 = scalar_lea.sflag [#allocation3], %s158_s23  ;;  %s1285_s6 = scalar_lea.hbm %s1516_s28, 64 }
  0x36   : > { %p1286_p2 = scmp.ne.s32.totalorder %s1516_s28, %s1285_s6  ;;  %p1287_p7 = pneg %p1518_p11 }
  0x37   : > { %s1290_s9 = scalar_lea.hbm %s1655_s0, 128  ;;  %p1291_p13 = scmp.lt.s32.totalorder %s1516_s28, %s1655_s0 }
  0x38   : > { %p1288_p9 = pnand %p1287_p7, %p1286_p2  ;;  %p1292_p0 = scmp.lt.s32.totalorder %s1290_s9, %s1285_s6 }
  0x3a   : > { %p1289_p12 = pneg %p1288_p9  ;;  %p1293_p3 = por %p1292_p0, %p1291_p13 }
  0x3c   : > { %p1294_p5 = pnand %p1293_p3, %p1289_p12 }
  0x3e   : > { %1297 = shalt.err (!%p1294_p5)
}
  0x3f   : > { %s1298_s24 = scalar_lea.vmem %s170_s30, 64  ;;  %s1389_s23 = smov [#allocation2]  }
  0x40   : > { %p1299_p1 = scmp.ne.s32.totalorder %s170_s30, %s1298_s24  ;;  %s1303_s25 = sshll.u32 %s1389_s23, 4  ;;  %s1304_s25 = int_to_ptr.vmem [resolvable:$false] %s1303_s25 }
  0x41   : > { %s1305_s26 = scalar_lea.vmem %s1304_s25, 128  ;;  %p1306_p2 = scmp.lt.s32.totalorder %s170_s30, %s1304_s25 }
  0x42   : > { %p1301_p6 = pnand %p1299_p1, %p1287_p7  ;;  %p1307_p9 = scmp.lt.s32.totalorder %s1305_s26, %s1298_s24 }
  0x44   : > { %p1302_p10 = pneg %p1301_p6  ;;  %p1308_p4 = por %p1307_p9, %p1306_p2 }
  0x46   : > { %p1309_p8 = pnand %p1308_p4, %p1302_p10 }
  0x48   : > { %1312 = shalt.err (!%p1309_p8)
}
  0x49   : > { %1134 = dma.hbm_to_vmem [thread:$0]  (!%p1518_p11), %s1516_s28, 64, %s170_s30, %s159_s5  }
  0x4a   : > { %p1669_p12 = scmp.ne.s32.totalorder %s1665_s20, 0 }
  0x4b   : > { %s1539_s27 = sand.u32 (!%p1669_p12), 1, %s1373_s13   ;;  %p1670_p1 = scmp.ne.s32.totalorder (!%p1669_p12), %s1663_s18, 0 }
  0x4c   : > { %178 = sbr.rel (%p1669_p12) target bundleno = 1202 (0x4b2), region = 32  ;;  %s914_s29 = sshll.u32 (!%p1669_p12), %s1539_s27, 2 }
  0x4d   : > { %s181_s6 = scalar_lea.sflag (!%p1669_p12), [#allocation3], %s1539_s27  ;;  %s1545_s7 = scalar_lea.vmem (!%p1669_p12), [#allocation2], %s914_s29 }
  0x51   : > { %1356 = dma.done.wait (%p1670_p1), %s181_s6, 64  }
  0x52   : > { %1358 = vsyncadd (%p1670_p1), %s181_s6, 4294967232  ;;  %p1671_p4 = scmp.eq.s32.totalorder %s1434_s16, 0 }
  0x54   : > { %1360 = dma.done.wait (%p1671_p4), [#allocation6], 5200   ;;  %p1672_p6 = pmov %p1671_p4 }
  0x55   : > { %v1390_v0 = vmov 0.0   ;;  %vm1391_vm0 = vmmov 0   ;;  %v1185_v1 = vld [vmem:[#allocation5 + $0x38] sm:$0xff]   ;;  %v1186_v2 = vld [vmem:[#allocation5 + $0x30] sm:$0xff]   ;;  %v1187_v3 = vld [vmem:[#allocation5 + $0x28] sm:$0xff]   ;;  %s964_s18 = sshll.u32 %s1434_s16, 6 }
  0x56   : > { %1362 = vsyncadd (%p1672_p6), [#allocation6], 4294962096  ;;  %1012 = vmatprep.subr.bf16.mxu0 %v1390_v0  ;;  %1028 = vmatprep.mubr.msk.bf16.mxu0 %vm1391_vm0, %v1390_v0  ;;  %v1193_v4 = vld [vmem:[#allocation5 + $0x78] sm:$0xff]   ;;  %v1188_v5 = vld [vmem:[#allocation5 + $0x20] sm:$0xff]   ;;  %s214_s20 = scalar_lea.vmem [#allocation8], %s914_s29  ;;  %s1612_s5 = scalar_lea.hbm %s1658_s3, %s964_s18 }
  0x57   : > { %1032 = vmatprep.subr.bf16.mxu1 %v1390_v0  ;;  %1048 = vmatprep.mubr.msk.bf16.mxu1 %vm1391_vm0, %v1390_v0  ;;  %v1194_v6 = vld [vmem:[#allocation5 + $0x70] sm:$0xff]   ;;  %v1189_v7 = vld [vmem:[#allocation5 + $0x18] sm:$0xff]   ;;  %v1191_v9 = vld [vmem:[#allocation5 + $0x8] sm:$0xff]   ;;  %s817_s28 = sshll.u32 %s214_s20, 4  ;;  %s804_s16 = scalar_lea.sflag [#allocation4], %s1539_s27  ;;  %s1614_s28 = int_to_ptr.vmem [resolvable:$true] %s817_s28 }
  0x58   : > { %1013 = vmatpush3.bf16.msra.mxu0 %v1185_v1  ;;  %1033 = vmatpush3.bf16.msra.mxu1 %v1193_v4  ;;  %v1190_v8 = vld [vmem:[#allocation5 + $0x10] sm:$0xff]   ;;  %v1192_v10 = vld [vmem:[#allocation5] sm:$0xff]   ;;  %v217_v11 = vld [vmem:[%s1545_s7] sm:$0xf]  ;;  %s1313_s8 = scalar_lea.vmem %s1614_s28, 64  ;;  %p1673_p10 = scmp.ne.s32.totalorder %s1667_s22, 0 }
  0x59   : > { %1014 = vmatprep.subr.bf16.mxu0 %v1390_v0  ;;  %1034 = vmatprep.subr.bf16.mxu1 %v1390_v0  ;;  %v1195_v12 = vld [vmem:[#allocation5 + $0x68] sm:$0xff]   ;;  %v1196_v13 = vld [vmem:[#allocation5 + $0x60] sm:$0xff]   ;;  %v1197_v14 = vld [vmem:[#allocation5 + $0x58] sm:$0xff]   ;;  %p1314_p8 = scmp.ne.s32.totalorder %s1614_s28, %s1313_s8  ;;  %s1392_s9 = smov [#allocation8]  }
  0x5a   : > { %v1198_v15 = vld [vmem:[#allocation5 + $0x50] sm:$0xff]   ;;  %v1199_v16 = vld [vmem:[#allocation5 + $0x48] sm:$0xff]   ;;  %v1200_v17 = vld [vmem:[#allocation5 + $0x40] sm:$0xff]   ;;  %s1317_s11 = sshll.u32 %s1392_s9, 4  ;;  %s1318_s11 = int_to_ptr.vmem [resolvable:$false] %s1317_s11 }
  0x5b   : > { %v1201_v18 = vld [vmem:[#allocation5 + $0xb8] sm:$0xff]   ;;  %v1202_v19 = vld [vmem:[#allocation5 + $0xb0] sm:$0xff]   ;;  %v918_v20 = vld [vmem:[#allocation7] ss:$0 sm:$0xff]  ;;  %p1315_p11 = pnand %p1314_p8, %p1673_p10  ;;  %s1319_s17 = scalar_lea.vmem %s1318_s11, 128 }
  0x5c   : > { %1015 = vmatpush3.bf16.msra.mxu0 %v1186_v2  ;;  %1035 = vmatpush3.bf16.msra.mxu1 %v1194_v6  ;;  %v1203_v31 = vld [vmem:[#allocation5 + $0xa8] sm:$0xff]   ;;  %v1204_v32 = vld [vmem:[#allocation5 + $0xa0] sm:$0xff]   ;;  %v1205_v33 = vld [vmem:[#allocation5 + $0x98] sm:$0xff]   ;;  %p1320_p13 = scmp.lt.s32.totalorder %s1614_s28, %s1318_s11  ;;  %p1321_p0 = scmp.lt.s32.totalorder %s1319_s17, %s1313_s8 }
  0x5d   : > { %1016 = vmatprep.subr.bf16.mxu0 %v1390_v0  ;;  %1036 = vmatprep.subr.bf16.mxu1 %v1390_v0  ;;  %v1206_v34 = vld [vmem:[#allocation5 + $0x90] sm:$0xff]   ;;  %v1207_v35 = vld [vmem:[#allocation5 + $0x88] sm:$0xff]   ;;  %v1208_v36 = vld [vmem:[#allocation5 + $0x80] sm:$0xff]   ;;  %p1316_p7 = pneg %p1315_p11 }
  0x5e   : > { %v1209_v37 = vld [vmem:[#allocation5 + $0xf8] sm:$0xff]   ;;  %v1210_v38 = vld [vmem:[#allocation5 + $0xf0] sm:$0xff]   ;;  %v927_v39 = vld [vmem:[#allocation7 + $0x1] ss:$0 sm:$0xff]  ;;  %p1322_p3 = por %p1321_p0, %p1320_p13 }
  0x5f   : > { %v1211_v50 = vld [vmem:[#allocation5 + $0xe8] sm:$0xff]   ;;  %v1212_v51 = vld [vmem:[#allocation5 + $0xe0] sm:$0xff]   ;;  %v1213_v52 = vld [vmem:[#allocation5 + $0xd8] sm:$0xff]  }
  0x60   : > { %1017 = vmatpush3.bf16.msra.mxu0 %v1187_v3  ;;  %1037 = vmatpush3.bf16.msra.mxu1 %v1195_v12  ;;  %v1214_v53 = vld [vmem:[#allocation5 + $0xd0] sm:$0xff]   ;;  %v1215_v54 = vld [vmem:[#allocation5 + $0xc8] sm:$0xff]   ;;  %v1216_v55 = vld [vmem:[#allocation5 + $0xc0] sm:$0xff]   ;;  %p1323_p5 = pnand %p1322_p3, %p1316_p7 }
  0x61   : > { %1018 = vmatprep.subr.bf16.mxu0 %v1390_v0  ;;  %1038 = vmatprep.subr.bf16.mxu1 %v1390_v0  ;;  %v1217_v56 = vld [vmem:[#allocation5 + $0x138] sm:$0xff]   ;;  %v1218_v57 = vld [vmem:[#allocation5 + $0x130] sm:$0xff]   ;;  %v936_v58 = vld [vmem:[#allocation7 + $0x2] ss:$0 sm:$0xff] }
  0x62   : > { %v1219_v6 = vld [vmem:[#allocation5 + $0x128] sm:$0xff]   ;;  %v945_v12 = vld [vmem:[#allocation7 + $0x3] ss:$0 sm:$0xff] }
  0x64   : > { %1019 = vmatpush3.bf16.msra.mxu0 %v1188_v5  ;;  %1039 = vmatpush3.bf16.msra.mxu1 %v1196_v13 }
  0x65   : > { %1020 = vmatprep.subr.bf16.mxu0 %v1390_v0  ;;  %1040 = vmatprep.subr.bf16.mxu1 %v1390_v0 }
  0x68   : > { %1021 = vmatpush3.bf16.msra.mxu0 %v1189_v7  ;;  %1041 = vmatpush3.bf16.msra.mxu1 %v1197_v14  ;;  %v1220_v7 = vld [vmem:[#allocation5 + $0x120] sm:$0xff]  }
  0x69   : > { %1022 = vmatprep.subr.bf16.mxu0 %v1390_v0  ;;  %1042 = vmatprep.subr.bf16.mxu1 %v1390_v0 }
  0x6c   : > { %1023 = vmatpush3.bf16.msra.mxu0 %v1190_v8  ;;  %1043 = vmatpush3.bf16.msra.mxu1 %v1198_v15  ;;  %v1221_v8 = vld [vmem:[#allocation5 + $0x118] sm:$0xff]  }
  0x6d   : > { %1024 = vmatprep.subr.bf16.mxu0 %v1390_v0  ;;  %1044 = vmatprep.subr.bf16.mxu1 %v1390_v0 }
  0x70   : > { %1025 = vmatpush3.bf16.msra.mxu0 %v1191_v9  ;;  %1045 = vmatpush3.bf16.msra.mxu1 %v1199_v16  ;;  %v1222_v9 = vld [vmem:[#allocation5 + $0x110] sm:$0xff]  }
  0x71   : > { %1026 = vmatprep.subr.bf16.mxu0 %v1390_v0  ;;  %1046 = vmatprep.subr.bf16.mxu1 %v1390_v0 }
  0x74   : > { %1027 = vmatpush3.bf16.msra.mxu0 %v1192_v10  ;;  %1047 = vmatpush3.bf16.msra.mxu1 %v1200_v17  ;;  %v1223_v10 = vld [vmem:[#allocation5 + $0x108] sm:$0xff]  }
  0x75   : > { %1052 = vmatprep.subr.bf16.mxu0 %v1390_v0  ;;  %1072 = vmatprep.subr.bf16.mxu1 %v1390_v0 }
  0x77   : > { %1029 = vmatmul.mubr.bf16.vlgmr.msra.gmra.mxu0 %v217_v11  ;;  %v1224_v11 = vld [vmem:[#allocation5 + $0x100] sm:$0xff]  }
  0x78   : > { %1068 = vmatprep.mubr.msk.bf16.mxu0 %vm1391_vm0, %v1390_v0  ;;  %1053 = vmatpush3.bf16.msra.mxu0 %v1201_v18 }
  0x79   : > { %1054 = vmatprep.subr.bf16.mxu0 %v1390_v0 }
  0x7c   : > { %1055 = vmatpush3.bf16.msra.mxu0 %v1202_v19 }
  0x7d   : > { %1056 = vmatprep.subr.bf16.mxu0 %v1390_v0 }
  0x80   : > { %1057 = vmatpush3.bf16.msra.mxu0 %v1203_v31 }
  0x81   : > { %1058 = vmatprep.subr.bf16.mxu0 %v1390_v0 }
  0x84   : > { %1059 = vmatpush3.bf16.msra.mxu0 %v1204_v32 }
  0x85   : > { %1060 = vmatprep.subr.bf16.mxu0 %v1390_v0 }
  0x88   : > { %1061 = vmatpush3.bf16.msra.mxu0 %v1205_v33 }
  0x89   : > { %1062 = vmatprep.subr.bf16.mxu0 %v1390_v0 }
  0x8c   : > { %1063 = vmatpush3.bf16.msra.mxu0 %v1206_v34 }
  0x8d   : > { %1064 = vmatprep.subr.bf16.mxu0 %v1390_v0 }
  0x90   : > { %1065 = vmatpush3.bf16.msra.mxu0 %v1207_v35 }
  0x91   : > { %1066 = vmatprep.subr.bf16.mxu0 %v1390_v0 }
  0x94   : > { %1067 = vmatpush3.bf16.msra.mxu0 %v1208_v36 }
  0x95   : > { %1092 = vmatprep.subr.bf16.mxu0 %v1390_v0 }
 0x137   : > { %v323_v21 = vpop.f32.mrf.mxu0 }
 0x138   : > { %v324_v22 = vadd.f32 %v918_v20, %v323_v21 }
 0x139   : > { %v1030_v23 = vpop.f32.mrf.mxu0 }
 0x13a   : > { %v329_v24 = vpack.c.bf16 %v324_v22, %v324_v22  ;;  %v954_v23 = vld [vmem:[#allocation7 + $0x4] ss:$0 sm:$0xff] }
 0x13b   : > { %v326_v25 = vpop.f32.mrf.mxu0 }
 0x13c   : > { %v330_v26 = vmul.bf16 1056980736, %v329_v24 }
 0x13d   : > { %v1031_v27 = vpop.f32.mrf.mxu0 }
 0x13e   : > { %1225 = vtanh.bf16 %v330_v26 }
 0x14c   : > { %v1226_v28 = vpop.eup %1225 }
 0x14d   : > { %v332_v29 = vmul.bf16 1056980736, %v1226_v28 }
 0x14f   : > { %v333_v30 = vadd.bf16 1056980736, %v332_v29 }
 0x151   : > { %1049 = vmatmul.mubr.bf16.vlgmr.msra.gmra.mxu1 %v333_v30 }
 0x152   : > { %1088 = vmatprep.mubr.msk.bf16.mxu1 %vm1391_vm0, %v1390_v0  ;;  %1073 = vmatpush3.bf16.msra.mxu1 %v1209_v37 }
 0x153   : > { %1074 = vmatprep.subr.bf16.mxu1 %v1390_v0 }
 0x156   : > { %1075 = vmatpush3.bf16.msra.mxu1 %v1210_v38 }
 0x157   : > { %1076 = vmatprep.subr.bf16.mxu1 %v1390_v0 }
 0x15a   : > { %1077 = vmatpush3.bf16.msra.mxu1 %v1211_v50 }
 0x15b   : > { %1078 = vmatprep.subr.bf16.mxu1 %v1390_v0 }
 0x15e   : > { %1079 = vmatpush3.bf16.msra.mxu1 %v1212_v51 }
 0x15f   : > { %1080 = vmatprep.subr.bf16.mxu1 %v1390_v0 }
 0x162   : > { %1081 = vmatpush3.bf16.msra.mxu1 %v1213_v52 }
 0x163   : > { %1082 = vmatprep.subr.bf16.mxu1 %v1390_v0 }
 0x166   : > { %1083 = vmatpush3.bf16.msra.mxu1 %v1214_v53 }
 0x167   : > { %1084 = vmatprep.subr.bf16.mxu1 %v1390_v0 }
 0x16a   : > { %1085 = vmatpush3.bf16.msra.mxu1 %v1215_v54 }
 0x16b   : > { %1086 = vmatprep.subr.bf16.mxu1 %v1390_v0 }
 0x16e   : > { %1087 = vmatpush3.bf16.msra.mxu1 %v1216_v55 }
 0x211   : > { %v441_v40 = vpop.f32.mrf.mxu1 }
 0x212   : > { %v442_v41 = vadd.f32 %v927_v39, %v441_v40 }
 0x213   : > { %v1050_v42 = vpop.f32.mrf.mxu1 }
 0x214   : > { %v447_v43 = vpack.c.bf16 %v442_v41, %v442_v41 }
 0x215   : > { %v444_v44 = vpop.f32.mrf.mxu1 }
 0x216   : > { %v448_v45 = vmul.bf16 1056980736, %v447_v43 }
 0x217   : > { %v1051_v46 = vpop.f32.mrf.mxu1 }
 0x218   : > { %1227 = vtanh.bf16 %v448_v45 }
 0x226   : > { %v1228_v47 = vpop.eup %1227 }
 0x227   : > { %v450_v48 = vmul.bf16 1056980736, %v1228_v47 }
 0x229   : > { %v451_v49 = vadd.bf16 1056980736, %v450_v48 }
 0x22b   : > { %1069 = vmatmul.mubr.bf16.vlgmr.msra.gmra.mxu0 %v451_v49 }
 0x22c   : > { %1108 = vmatprep.mubr.msk.bf16.mxu0 %vm1391_vm0, %v1390_v0  ;;  %1093 = vmatpush3.bf16.msra.mxu0 %v1217_v56 }
 0x22d   : > { %1094 = vmatprep.subr.bf16.mxu0 %v1390_v0 }
 0x230   : > { %1095 = vmatpush3.bf16.msra.mxu0 %v1218_v57 }
 0x231   : > { %1096 = vmatprep.subr.bf16.mxu0 %v1390_v0 }
 0x234   : > { %1097 = vmatpush3.bf16.msra.mxu0 %v1219_v6 }
 0x235   : > { %1098 = vmatprep.subr.bf16.mxu0 %v1390_v0 }
 0x238   : > { %1099 = vmatpush3.bf16.msra.mxu0 %v1220_v7 }
 0x239   : > { %1100 = vmatprep.subr.bf16.mxu0 %v1390_v0 }
 0x23c   : > { %1101 = vmatpush3.bf16.msra.mxu0 %v1221_v8 }
 0x23d   : > { %1102 = vmatprep.subr.bf16.mxu0 %v1390_v0 }
 0x240   : > { %1103 = vmatpush3.bf16.msra.mxu0 %v1222_v9 }
 0x241   : > { %1104 = vmatprep.subr.bf16.mxu0 %v1390_v0 }
 0x244   : > { %1105 = vmatpush3.bf16.msra.mxu0 %v1223_v10 }
 0x245   : > { %1106 = vmatprep.subr.bf16.mxu0 %v1390_v0 }
 0x248   : > { %1107 = vmatpush3.bf16.msra.mxu0 %v1224_v11 }
 0x2eb   : > { %v559_v59 = vpop.f32.mrf.mxu0 }
 0x2ec   : > { %v560_v60 = vadd.f32 %v936_v58, %v559_v59 }
 0x2ed   : > { %v1070_v61 = vpop.f32.mrf.mxu0 }
 0x2ee   : > { %v565_v62 = vpack.c.bf16 %v560_v60, %v560_v60 }
 0x2ef   : > { %v562_v63 = vpop.f32.mrf.mxu0 }
 0x2f0   : > { %v566_v1 = vmul.bf16 1056980736, %v565_v62 }
 0x2f1   : > { %v1071_v2 = vpop.f32.mrf.mxu0 }
 0x2f2   : > { %1229 = vtanh.bf16 %v566_v1 }
 0x300   : > { %v1230_v3 = vpop.eup %1229 }
 0x301   : > { %v568_v4 = vmul.bf16 1056980736, %v1230_v3 }
 0x303   : > { %v569_v5 = vadd.bf16 1056980736, %v568_v4 }
 0x305   : > { %1089 = vmatmul.mubr.bf16.vlgmr.msra.gmra.mxu1 %v569_v5 }
 0x3c5   : > { %v677_v13 = vpop.f32.mrf.mxu1 }
 0x3c6   : > { %v678_v14 = vadd.f32 %v945_v12, %v677_v13 }
 0x3c7   : > { %v1090_v15 = vpop.f32.mrf.mxu1 }
 0x3c8   : > { %v683_v16 = vpack.c.bf16 %v678_v14, %v678_v14 }
 0x3c9   : > { %v680_v17 = vpop.f32.mrf.mxu1 }
 0x3ca   : > { %v684_v18 = vmul.bf16 1056980736, %v683_v16 }
 0x3cb   : > { %v1091_v19 = vpop.f32.mrf.mxu1 }
 0x3cc   : > { %1231 = vtanh.bf16 %v684_v18 }
 0x3da   : > { %v1232_v20 = vpop.eup %1231 }
 0x3db   : > { %v686_v21 = vmul.bf16 1056980736, %v1232_v20 }
 0x3dd   : > { %v687_v22 = vadd.bf16 1056980736, %v686_v21 }
 0x3df   : > { %1109 = vmatmul.mubr.bf16.vlgmr.msra.gmra.mxu0 %v687_v22 }
 0x49f   : > { %v795_v0 = vpop.f32.mrf.mxu0 }
 0x4a0   : > { %v796_v24 = vadd.f32 %v954_v23, %v795_v0 }
 0x4a1   : > { %v1110_v25 = vpop.f32.mrf.mxu0 }
 0x4a2   : > { %v801_v26 = vpack.c.bf16 %v796_v24, %v796_v24 }
 0x4a3   : > { %v798_v27 = vpop.f32.mrf.mxu0 }
 0x4a4   : > { %802 = vst [vmem:[%s214_s20] sm:$0xf] %v801_v26 }
 0x4a5   : > { %v1111_v28 = vpop.f32.mrf.mxu0 }
 0x4a6   : > { %1326 = shalt.err (!%p1323_p5)
}
 0x4a7   : > { %s1327_s24 = scalar_lea.hbm %s1612_s5, 64  ;;  %s1331_s26 = scalar_lea.hbm %s1658_s3, 128 }
 0x4a8   : > { %p1328_p2 = scmp.ne.s32.totalorder %s1612_s5, %s1327_s24  ;;  %p1332_p1 = scmp.lt.s32.totalorder %s1612_s5, %s1658_s3 }
 0x4a9   : > { %p1333_p4 = scmp.lt.s32.totalorder %s1331_s26, %s1327_s24 }
 0x4aa   : > { %p1329_p9 = pnand %p1328_p2, %p1673_p10 }
 0x4ab   : > { %p1334_p6 = por %p1333_p4, %p1332_p1 }
 0x4ac   : > { %p1330_p12 = pneg %p1329_p9 }
 0x4ae   : > { %p1335_p8 = pnand %p1334_p6, %p1330_p12 }
 0x4b0   : > { %1338 = shalt.err (!%p1335_p8)
}
 0x4b1   : > { %1122 = dma.vmem_to_hbm [thread:$0]  (%p1673_p10), %s1614_s28, 64, %s1612_s5, %s804_s16  }
 0x4b2 PF: > { %s829_s6 = sand.u32 1, %s1369_s12   ;;  %p1674_p11 = scmp.ne.s32.totalorder %s1664_s19, 0 }
 0x4b3   : > { %p1675_p7 = scmp.ge.s32.totalorder %s1381_s15, 2  ;;  %s830_s7 = scalar_lea.sflag [#allocation4], %s829_s6 }
 0x4b5   : > { %p1136_p13 = pnand %p1675_p7, %p1674_p11 }
 0x4b7   : > { %p1137_p0 = pneg %p1136_p13 }
 0x4b9   : > { %1364 = dma.done.wait (%p1137_p0), %s830_s7, 64  }
 0x4ba   : > { %1366 = vsyncadd (%p1137_p0), %s830_s7, 4294967232  ;;  %p17_p3 = scmp.ge.s32.totalorder %s1493_s10, 4   ;;  %s1676_s12 = smov %s1373_s13 }
 0x4bb   : > { %s1677_s13 = smov %s1377_s14  ;;  %s1678_s14 = smov %s1502_s21 }
 0x4bc   : > { %s1679_s15 = smov %s1493_s10  ;;  %19 = sbr.rel (!%p17_p3) target bundleno = 6 (0x6), region = 93 }
 0x4c1   :  { %835 = vsyncpa [#allocation3], 1 }
 0x4c2   :  { %837 = vsyncpa [#allocation3 + $0x1], 1 }
 0x4c3   :  { %838 = vsyncpa [#allocation6], 1 }
 0x4c4   :  { %839 = vsyncpa [#allocation4], 1 }
 0x4c5   :  { %841 = vsyncpa [#allocation4 + $0x1], 1 }

</bundles_post_ra>
